<compile_context>
chip_gen: v7x
topology: tpu7x:2x2x1
jax: 0.10.0
libtpu: 0.0.40
codegen_flags: <defaults>
</compile_context>

<pallas_src>
import functools

import jax
import jax.numpy as jnp
from jax.experimental import pallas as pl
from jax.experimental.pallas import tpu as pltpu


def _round_up(n, m):
    return (n + m - 1) // m * m


# ---------------------------------------------------------------------------
# Kernel
# ---------------------------------------------------------------------------
def koopman_kernel(
    xu_ref,                                  # [TILE_B, state+action] f32
    w1_ref, b1_ref,                          # [state+action, 128] (zero-extended), [1, 128]
    w2_ref, b2_ref,                          # [128, latent], [1, latent]
    kb_ref,                                  # [latent+action, latent]  ( = [K.T ; B.T] )
    w3_ref, b3_ref,                          # [latent, 128], [1, 128]
    w4_ref, b4_ref,                          # [128, state], [1, state]
    out_ref,                                 # [TILE_B, OUT_PAD] f32  (x_next | z | z_next | 0-pad)
    *, state_dim, action_dim, latent_dim, out_pad,
):
    cdt = w1_ref.dtype                       # MXU operand dtype (bf16 or f32)
    xu = xu_ref[...]                         # f32

    # --- encoder: Linear(state,128) -> ReLU -> Linear(128, latent) ---
    # W1 is zero-extended over the action columns, so feeding the fused (x|u)
    # input is exactly x @ W1.T.
    h1 = jnp.dot(xu.astype(cdt), w1_ref[...],
                 preferred_element_type=jnp.float32) + b1_ref[...]
    h1 = jnp.maximum(h1, 0.0)
    z = jnp.dot(h1.astype(cdt), w2_ref[...],
                preferred_element_type=jnp.float32) + b2_ref[...]

    # --- Koopman linear dynamics, fused:  [z | u] @ [K.T ; B.T] ---
    u = xu[:, state_dim:state_dim + action_dim]
    zu = jnp.concatenate([z, u], axis=-1)
    z_next = jnp.dot(zu.astype(cdt), kb_ref[...],
                     preferred_element_type=jnp.float32)

    # --- decoder: Linear(latent,128) -> ReLU -> Linear(128, state) ---
    h2 = jnp.dot(z_next.astype(cdt), w3_ref[...],
                 preferred_element_type=jnp.float32) + b3_ref[...]
    h2 = jnp.maximum(h2, 0.0)
    x_next = jnp.dot(h2.astype(cdt), w4_ref[...],
                     preferred_element_type=jnp.float32) + b4_ref[...]

    # --- pack into one lane-dense slab and do a single full-width store ---
    used = state_dim + 2 * latent_dim
    pieces = [x_next, z, z_next]
    if out_pad > used:
        pieces.append(jnp.zeros((x_next.shape[0], out_pad - used), jnp.float32))
    out_ref[...] = jnp.concatenate(pieces, axis=-1).astype(out_ref.dtype)


# ---------------------------------------------------------------------------
# Parameter preparation (done ONCE, outside the hot path)
# ---------------------------------------------------------------------------
def prepare_params(params, compute_dtype=jnp.bfloat16):
    """Pre-transpose / stack / cast the PyTorch-layout params for the kernel."""
    hidden = params["enc_w1"].shape[0]
    action_dim = params["B"].shape[1]

    w1 = params["enc_w1"].T.astype(compute_dtype)                    # [state, 128]
    w1_ext = jnp.concatenate(                                        # [state+action, 128]
        [w1, jnp.zeros((action_dim, hidden), compute_dtype)], axis=0)
    kb = jnp.concatenate(                                            # [latent+action, latent]
        [params["K"].T, params["B"].T], axis=0).astype(compute_dtype)

    return dict(
        w1=w1_ext,
        b1=params["enc_b1"][None, :].astype(jnp.float32),
        w2=params["enc_w2"].T.astype(compute_dtype),                 # [128, latent]
        b2=params["enc_b2"][None, :].astype(jnp.float32),
        kb=kb,
        w3=params["dec_w1"].T.astype(compute_dtype),                 # [latent, 128]
        b3=params["dec_b1"][None, :].astype(jnp.float32),
        w4=params["dec_w2"].T.astype(compute_dtype),                 # [128, state]
        b4=params["dec_b2"][None, :].astype(jnp.float32),
    )


# ---------------------------------------------------------------------------
# Wrapper
# ---------------------------------------------------------------------------
def koopman_forward(x, u, prep, *, tile_b=None):
    """x: [B, state_dim] f32, u: [B, action_dim] f32, prep: prepare_params(...).

    Returns (x_next_pred, z, z_next_pred), all float32."""
    batch, state_dim = x.shape
    action_dim = u.shape[1]
    latent_dim = prep["w2"].shape[1]
    hidden = prep["w2"].shape[0]
    in_dim = state_dim + action_dim
    used = state_dim + 2 * latent_dim
    out_pad = _round_up(used, 128)

    # Batch tile: large enough to amortize ~0.35us/step grid overhead, small
    # enough to fit comfortably in every generation's scoped VMEM (incl. v7x).
    if tile_b is None:
        tile_b = min(512, _round_up(batch, 8))
    tile_b = max(8, _round_up(tile_b, 8))
    b_pad = _round_up(batch, tile_b)
    n_tiles = b_pad // tile_b

    # Fuse x|u into one input stream; pad batch to a tile multiple.
    xu = jnp.concatenate([x, u], axis=-1)
    if b_pad != batch:
        xu = jnp.pad(xu, ((0, b_pad - batch), (0, 0)))

    weights = (prep["w1"], prep["b1"], prep["w2"], prep["b2"], prep["kb"],
               prep["w3"], prep["b3"], prep["w4"], prep["b4"])

    # Activations/outputs tile over the batch grid; weights are resident
    # (constant index_map -> no re-DMA across grid steps).
    act_spec = pl.BlockSpec((tile_b, in_dim), lambda i: (i, 0))
    out_spec = pl.BlockSpec((tile_b, out_pad), lambda i: (i, 0))
    weight_specs = [pl.BlockSpec(w.shape, lambda i: (0, 0)) for w in weights]

    flops = 2 * b_pad * (
        in_dim * hidden                      # encoder layer 1
        + hidden * latent_dim                # encoder layer 2
        + (latent_dim + action_dim) * latent_dim   # fused Koopman step
        + latent_dim * hidden                # decoder layer 1
        + hidden * state_dim                 # decoder layer 2
    )
    weight_bytes = sum(int(w.size) * w.dtype.itemsize for w in weights)
    bytes_accessed = int(xu.size) * 4 + b_pad * out_pad * 4 + weight_bytes

    kernel = functools.partial(
        koopman_kernel,
        state_dim=state_dim, action_dim=action_dim,
        latent_dim=latent_dim, out_pad=out_pad,
    )

    packed = pl.pallas_call(
        kernel,
        out_shape=jax.ShapeDtypeStruct((b_pad, out_pad), jnp.float32),
        grid=(n_tiles,),
        in_specs=[act_spec] + weight_specs,
        out_specs=out_spec,
        compiler_params=pltpu.CompilerParams(
            dimension_semantics=("parallel",)),
        cost_estimate=pl.CostEstimate(
            flops=flops, transcendentals=0, bytes_accessed=bytes_accessed),
    )(xu, *weights)

    x_next = packed[:batch, :state_dim]
    z = packed[:batch, state_dim:state_dim + latent_dim]
    z_next = packed[:batch, state_dim + latent_dim:state_dim + 2 * latent_dim]
    return x_next, z, z_next


# ---------------------------------------------------------------------------
# Init + pure-JAX reference (PyTorch-equivalent semantics)
# ---------------------------------------------------------------------------
def init_params(key, state_dim, action_dim, latent_dim, hidden=128):
    ks = jax.random.split(key, 10)

    def lin(kw, kb, fan_in, fan_out):
        scale = 1.0 / jnp.sqrt(fan_in)
        w = jax.random.uniform(kw, (fan_out, fan_in), jnp.float32, -scale, scale)
        b = jax.random.uniform(kb, (fan_out,), jnp.float32, -scale, scale)
        return w, b

    enc_w1, enc_b1 = lin(ks[0], ks[1], state_dim, hidden)
    enc_w2, enc_b2 = lin(ks[2], ks[3], hidden, latent_dim)
    dec_w1, dec_b1 = lin(ks[4], ks[5], latent_dim, hidden)
    dec_w2, dec_b2 = lin(ks[6], ks[7], hidden, state_dim)
    K = jax.random.normal(ks[8], (latent_dim, latent_dim), jnp.float32)
    B = jax.random.normal(ks[9], (latent_dim, action_dim), jnp.float32)
    return dict(
        enc_w1=enc_w1, enc_b1=enc_b1, enc_w2=enc_w2, enc_b2=enc_b2,
        dec_w1=dec_w1, dec_b1=dec_b1, dec_w2=dec_w2, dec_b2=dec_b2,
        K=K, B=B,
    )


def _reference(x, u, p):
    def lin(v, w, b):
        return v @ w.T + b
    z = lin(jnp.maximum(lin(x, p["enc_w1"], p["enc_b1"]), 0.0),
            p["enc_w2"], p["enc_b2"])
    z_next = z @ p["K"].T + u @ p["B"].T
    x_next = lin(jnp.maximum(lin(z_next, p["dec_w1"], p["dec_b1"]), 0.0),
                 p["dec_w2"], p["dec_b2"])
    return x_next, z, z_next


# ---------------------------------------------------------------------------
# Self-test
# ---------------------------------------------------------------------------
if __name__ == "__main__":
    batch, state_dim, action_dim, latent_dim = 8, 16, 4, 32

    key = jax.random.PRNGKey(0)
    kp, kx, ku = jax.random.split(key, 3)
    params = init_params(kp, state_dim, action_dim, latent_dim)
    x = jax.random.normal(kx, (batch, state_dim), jnp.float32)
    u = jax.random.normal(ku, (batch, action_dim), jnp.float32)

    rx, rz, rzn = _reference(x, u, params)

    # 1) f32 MXU operands: exact-semantics check, tight tolerance.
    prep_f32 = prepare_params(params, compute_dtype=jnp.float32)
    x_next, z, z_next = koopman_forward(x, u, prep_f32)
    jax.block_until_ready((x_next, z, z_next))
    assert jnp.allclose(x_next, rx, atol=1e-4, rtol=1e-4)
    assert jnp.allclose(z, rz, atol=1e-4, rtol=1e-4)
    assert jnp.allclose(z_next, rzn, atol=1e-4, rtol=1e-4)

    # 2) bf16 MXU operands + f32 accumulation (default perf path on v6e/v7x).
    prep_bf16 = prepare_params(params, compute_dtype=jnp.bfloat16)
    xb, zb, znb = koopman_forward(x, u, prep_bf16)
    jax.block_until_ready((xb, zb, znb))
    assert jnp.allclose(xb, rx, atol=5e-2, rtol=5e-2)
    assert jnp.allclose(zb, rz, atol=5e-2, rtol=5e-2)
    assert jnp.allclose(znb, rzn, atol=5e-2, rtol=5e-2)

    # 3) Multi-step batch grid + batch padding (40 rows, tile_b=16 -> grid (3,)).
    kx2, ku2 = jax.random.split(jax.random.PRNGKey(1))
    x2 = jax.random.normal(kx2, (40, state_dim), jnp.float32)
    u2 = jax.random.normal(ku2, (40, action_dim), jnp.float32)
    rx2, rz2, rzn2 = _reference(x2, u2, params)
    x_next2, z2, z_next2 = koopman_forward(x2, u2, prep_f32, tile_b=16)
    jax.block_until_ready((x_next2, z2, z_next2))
    assert jnp.allclose(x_next2, rx2, atol=1e-4, rtol=1e-4)
    assert jnp.allclose(z2, rz2, atol=1e-4, rtol=1e-4)
    assert jnp.allclose(z_next2, rzn2, atol=1e-4, rtol=1e-4)

    print("KERNEL_OK")
</pallas_src>

<mosaic_0001>
module attributes {stable_mosaic.version = 11 : i64} {
  func.func @koopman_kernel(%arg0: i32, %arg1: memref<8x20xf32, #tpu.memory_space<vmem>>, %arg2: memref<20x128xf32, #tpu.memory_space<vmem>>, %arg3: memref<1x128xf32, #tpu.memory_space<vmem>>, %arg4: memref<128x32xf32, #tpu.memory_space<vmem>>, %arg5: memref<1x32xf32, #tpu.memory_space<vmem>>, %arg6: memref<36x32xf32, #tpu.memory_space<vmem>>, %arg7: memref<32x128xf32, #tpu.memory_space<vmem>>, %arg8: memref<1x128xf32, #tpu.memory_space<vmem>>, %arg9: memref<128x16xf32, #tpu.memory_space<vmem>>, %arg10: memref<1x16xf32, #tpu.memory_space<vmem>>, %arg11: memref<8x128xf32, #tpu.memory_space<vmem>>) attributes {dimension_semantics = [#tpu.dimension_semantics<parallel>], iteration_bounds = array<i64: 1>, scalar_prefetch = 0 : i64, scratch_operands = 0 : i64, tpu.core_type = #tpu.core_type<tc>, window_params = [{transform_indices = @transform_0, window_bounds = array<i64: 8, 20>}, {pipeline_mode = #tpu.pipeline_mode<synchronous>, transform_indices = @transform_1, window_bounds = array<i64: 20, 128>}, {pipeline_mode = #tpu.pipeline_mode<synchronous>, transform_indices = @transform_2, window_bounds = array<i64: 1, 128>}, {pipeline_mode = #tpu.pipeline_mode<synchronous>, transform_indices = @transform_3, window_bounds = array<i64: 128, 32>}, {pipeline_mode = #tpu.pipeline_mode<synchronous>, transform_indices = @transform_4, window_bounds = array<i64: 1, 32>}, {pipeline_mode = #tpu.pipeline_mode<synchronous>, transform_indices = @transform_5, window_bounds = array<i64: 36, 32>}, {pipeline_mode = #tpu.pipeline_mode<synchronous>, transform_indices = @transform_6, window_bounds = array<i64: 32, 128>}, {pipeline_mode = #tpu.pipeline_mode<synchronous>, transform_indices = @transform_7, window_bounds = array<i64: 1, 128>}, {pipeline_mode = #tpu.pipeline_mode<synchronous>, transform_indices = @transform_8, window_bounds = array<i64: 128, 16>}, {pipeline_mode = #tpu.pipeline_mode<synchronous>, transform_indices = @transform_9, window_bounds = array<i64: 1, 16>}, {transform_indices = @transform_10, window_bounds = array<i64: 8, 128>}]} {
    %c0 = arith.constant 0 : index
    %c0_0 = arith.constant 0 : index
    %0 = vector.load %arg1[%c0, %c0_0] : memref<8x20xf32, #tpu.memory_space<vmem>>, vector<8x20xf32>
    %c0_1 = arith.constant 0 : index
    %c0_2 = arith.constant 0 : index
    %1 = vector.load %arg2[%c0_1, %c0_2] : memref<20x128xf32, #tpu.memory_space<vmem>>, vector<20x128xf32>
    %cst = arith.constant dense<0.000000e+00> : vector<8x128xf32>
    %2 = tpu.matmul %0, %1, %cst {dimension_numbers = #tpu.dot_dimension_numbers<[1], [0], [0], [1], [0, 0, 1, 1], [], []>} : vector<8x20xf32>, vector<20x128xf32>, vector<8x128xf32> -> vector<8x128xf32>
    %c0_3 = arith.constant 0 : index
    %c0_4 = arith.constant 0 : index
    %3 = vector.load %arg3[%c0_3, %c0_4] : memref<1x128xf32, #tpu.memory_space<vmem>>, vector<1x128xf32>
    %4 = vector.broadcast %3 : vector<1x128xf32> to vector<8x128xf32>
    %5 = arith.addf %2, %4 : vector<8x128xf32>
    %cst_5 = arith.constant 0.000000e+00 : f32
    %6 = vector.broadcast %cst_5 : f32 to vector<8x128xf32>
    %7 = arith.maximumf %5, %6 : vector<8x128xf32>
    %c0_6 = arith.constant 0 : index
    %c0_7 = arith.constant 0 : index
    %8 = vector.load %arg4[%c0_6, %c0_7] : memref<128x32xf32, #tpu.memory_space<vmem>>, vector<128x32xf32>
    %cst_8 = arith.constant dense<0.000000e+00> : vector<8x32xf32>
    %9 = tpu.matmul %7, %8, %cst_8 {dimension_numbers = #tpu.dot_dimension_numbers<[1], [0], [0], [1], [0, 0, 1, 1], [], []>} : vector<8x128xf32>, vector<128x32xf32>, vector<8x32xf32> -> vector<8x32xf32>
    %c0_9 = arith.constant 0 : index
    %c0_10 = arith.constant 0 : index
    %10 = vector.load %arg5[%c0_9, %c0_10] : memref<1x32xf32, #tpu.memory_space<vmem>>, vector<1x32xf32>
    %11 = vector.broadcast %10 : vector<1x32xf32> to vector<8x32xf32>
    %12 = arith.addf %9, %11 : vector<8x32xf32>
    %13 = vector.extract_strided_slice %0 {offsets = [0, 16], sizes = [8, 4], strides = [1, 1]} : vector<8x20xf32> to vector<8x4xf32>
    %14 = tpu.concatenate %12, %13 in 1 : vector<8x32xf32>, vector<8x4xf32> -> vector<8x36xf32>
    %c0_11 = arith.constant 0 : index
    %c0_12 = arith.constant 0 : index
    %15 = vector.load %arg6[%c0_11, %c0_12] : memref<36x32xf32, #tpu.memory_space<vmem>>, vector<36x32xf32>
    %cst_13 = arith.constant dense<0.000000e+00> : vector<8x32xf32>
    %16 = tpu.matmul %14, %15, %cst_13 {dimension_numbers = #tpu.dot_dimension_numbers<[1], [0], [0], [1], [0, 0, 1, 1], [], []>} : vector<8x36xf32>, vector<36x32xf32>, vector<8x32xf32> -> vector<8x32xf32>
    %c0_14 = arith.constant 0 : index
    %c0_15 = arith.constant 0 : index
    %17 = vector.load %arg7[%c0_14, %c0_15] : memref<32x128xf32, #tpu.memory_space<vmem>>, vector<32x128xf32>
    %cst_16 = arith.constant dense<0.000000e+00> : vector<8x128xf32>
    %18 = tpu.matmul %16, %17, %cst_16 {dimension_numbers = #tpu.dot_dimension_numbers<[1], [0], [0], [1], [0, 0, 1, 1], [], []>} : vector<8x32xf32>, vector<32x128xf32>, vector<8x128xf32> -> vector<8x128xf32>
    %c0_17 = arith.constant 0 : index
    %c0_18 = arith.constant 0 : index
    %19 = vector.load %arg8[%c0_17, %c0_18] : memref<1x128xf32, #tpu.memory_space<vmem>>, vector<1x128xf32>
    %20 = vector.broadcast %19 : vector<1x128xf32> to vector<8x128xf32>
    %21 = arith.addf %18, %20 : vector<8x128xf32>
    %cst_19 = arith.constant 0.000000e+00 : f32
    %22 = vector.broadcast %cst_19 : f32 to vector<8x128xf32>
    %23 = arith.maximumf %21, %22 : vector<8x128xf32>
    %c0_20 = arith.constant 0 : index
    %c0_21 = arith.constant 0 : index
    %24 = vector.load %arg9[%c0_20, %c0_21] : memref<128x16xf32, #tpu.memory_space<vmem>>, vector<128x16xf32>
    %cst_22 = arith.constant dense<0.000000e+00> : vector<8x16xf32>
    %25 = tpu.matmul %23, %24, %cst_22 {dimension_numbers = #tpu.dot_dimension_numbers<[1], [0], [0], [1], [0, 0, 1, 1], [], []>} : vector<8x128xf32>, vector<128x16xf32>, vector<8x16xf32> -> vector<8x16xf32>
    %c0_23 = arith.constant 0 : index
    %c0_24 = arith.constant 0 : index
    %26 = vector.load %arg10[%c0_23, %c0_24] : memref<1x16xf32, #tpu.memory_space<vmem>>, vector<1x16xf32>
    %27 = vector.broadcast %26 : vector<1x16xf32> to vector<8x16xf32>
    %28 = arith.addf %25, %27 : vector<8x16xf32>
    %cst_25 = arith.constant 0.000000e+00 : f32
    %29 = vector.broadcast %cst_25 : f32 to vector<8x48xf32>
    %30 = tpu.concatenate %28, %12, %16, %29 in 1 : vector<8x16xf32>, vector<8x32xf32>, vector<8x32xf32>, vector<8x48xf32> -> vector<8x128xf32>
    %c0_26 = arith.constant 0 : index
    %c0_27 = arith.constant 0 : index
    %31 = vector.load %arg11[%c0_26, %c0_27] : memref<8x128xf32, #tpu.memory_space<vmem>>, vector<8x128xf32>
    tpu.vector_store %arg11[%c0_26, %c0_27], %30 {strides = array<i32>} : memref<8x128xf32, #tpu.memory_space<vmem>>, vector<8x128xf32>,
    return
  }
  func.func @transform_0(%arg0: i32) -> (i32, i32) {
    %c0_i32 = arith.constant 0 : i32
    %c0_i32_0 = arith.constant 0 : i32
    return %arg0, %c0_i32 : i32, i32
  }
  func.func @transform_1(%arg0: i32) -> (i32, i32) {
    %c0_i32 = arith.constant 0 : i32
    %c0_i32_0 = arith.constant 0 : i32
    %c0_i32_1 = arith.constant 0 : i32
    return %c0_i32, %c0_i32_0 : i32, i32
  }
  func.func @transform_2(%arg0: i32) -> (i32, i32) {
    %c0_i32 = arith.constant 0 : i32
    %c0_i32_0 = arith.constant 0 : i32
    %c0_i32_1 = arith.constant 0 : i32
    return %c0_i32, %c0_i32_0 : i32, i32
  }
  func.func @transform_3(%arg0: i32) -> (i32, i32) {
    %c0_i32 = arith.constant 0 : i32
    %c0_i32_0 = arith.constant 0 : i32
    %c0_i32_1 = arith.constant 0 : i32
    return %c0_i32, %c0_i32_0 : i32, i32
  }
  func.func @transform_4(%arg0: i32) -> (i32, i32) {
    %c0_i32 = arith.constant 0 : i32
    %c0_i32_0 = arith.constant 0 : i32
    %c0_i32_1 = arith.constant 0 : i32
    return %c0_i32, %c0_i32_0 : i32, i32
  }
  func.func @transform_5(%arg0: i32) -> (i32, i32) {
    %c0_i32 = arith.constant 0 : i32
    %c0_i32_0 = arith.constant 0 : i32
    %c0_i32_1 = arith.constant 0 : i32
    return %c0_i32, %c0_i32_0 : i32, i32
  }
  func.func @transform_6(%arg0: i32) -> (i32, i32) {
    %c0_i32 = arith.constant 0 : i32
    %c0_i32_0 = arith.constant 0 : i32
    %c0_i32_1 = arith.constant 0 : i32
    return %c0_i32, %c0_i32_0 : i32, i32
  }
  func.func @transform_7(%arg0: i32) -> (i32, i32) {
    %c0_i32 = arith.constant 0 : i32
    %c0_i32_0 = arith.constant 0 : i32
    %c0_i32_1 = arith.constant 0 : i32
    return %c0_i32, %c0_i32_0 : i32, i32
  }
  func.func @transform_8(%arg0: i32) -> (i32, i32) {
    %c0_i32 = arith.constant 0 : i32
    %c0_i32_0 = arith.constant 0 : i32
    %c0_i32_1 = arith.constant 0 : i32
    return %c0_i32, %c0_i32_0 : i32, i32
  }
  func.func @transform_9(%arg0: i32) -> (i32, i32) {
    %c0_i32 = arith.constant 0 : i32
    %c0_i32_0 = arith.constant 0 : i32
    %c0_i32_1 = arith.constant 0 : i32
    return %c0_i32, %c0_i32_0 : i32, i32
  }
  func.func @transform_10(%arg0: i32) -> (i32, i32) {
    %c0_i32 = arith.constant 0 : i32
    %c0_i32_0 = arith.constant 0 : i32
    return %arg0, %c0_i32 : i32, i32
  }
}

</mosaic_0001>

<bundles_post_ra>
// kernel: tpu_custom_call.1
= control target key start
LH: loop header
LB: loop body
LE: loop exit
PB: predicated region body
PF: predicated region fallthrough
CT: control target
= control target key end

     0   :  { %v766_v2 = vmov 0.0|0.0   ;;  %vm767_vm0 = vmmov 0   ;;  %v768_v6 = vmov 0.0   ;;  %vm51_vm1 = vcmask 1043456   ;;  %s1025_s0 = inlined_call_operand.vmem [shape: f32[8,20], index: 0, kind: input, shape index: {}]   ;;  %s1026_s1 = inlined_call_operand.vmem [shape: f32[20,128], index: 1, kind: input, shape index: {}]   ;;  %s1027_s2 = inlined_call_operand.vmem [shape: f32[1,128], index: 2, kind: input, shape index: {}]   ;;  %s1028_s3 = inlined_call_operand.vmem [shape: f32[128,32], index: 3, kind: input, shape index: {}]   ;;  %s1029_s4 = inlined_call_operand.vmem [shape: f32[1,32], index: 4, kind: input, shape index: {}]   ;;  %s1030_s5 = inlined_call_operand.vmem [shape: f32[36,32], index: 5, kind: input, shape index: {}]   ;;  %s1031_s6 = inlined_call_operand.vmem [shape: f32[32,128], index: 6, kind: input, shape index: {}]   ;;  %s1032_s7 = inlined_call_operand.vmem [shape: f32[1,128], index: 7, kind: input, shape index: {}]   ;;  %s1033_s8 = inlined_call_operand.vmem [shape: f32[128,16], index: 8, kind: input, shape index: {}]   ;;  %s1034_s9 = inlined_call_operand.vmem [shape: f32[1,16], index: 9, kind: input, shape index: {}]   ;;  %s1035_s10 = inlined_call_operand.hbm [shape: f32[8,128], index: 10, kind: output, shape index: {}]  }
   0x1   :  { %v37_v0 = vld [vmem:[%s1026_s1] sm:$0xff]  ;;  %v38_v1 = vld [vmem:[%s1026_s1 + $0x8] sm:$0xff]  ;;  %673 = vmatprep.subr.bf16.mxu0 %v766_v2  ;;  %676 = vmatprep.subr.bf16.mxu1 %v766_v2  ;;  %v128_v8 = vld [vmem:[%s1028_s3 + $0x10] sm:$0xff]  ;;  %vm47_vm2 = vcmask 162816  }
   0x2   :  { %v674_v3 = vpack.c.bf16 %v38_v1, %v37_v0  ;;  %v126_v4 = vld [vmem:[%s1028_s3] sm:$0xff]  ;;  %v127_v5 = vld [vmem:[%s1028_s3 + $0x8] sm:$0xff]  ;;  %576 = vmatprep.mubr.msk.f32.mxu0 %vm767_vm0, %v768_v6  ;;  %v129_v9 = vld [vmem:[%s1028_s3 + $0x18] sm:$0xff]  ;;  %611 = vmatprep.mubr.msk.f32.mxu1 %vm767_vm0, %v768_v6 }
   0x3   :  { %v677_v7 = vpack.c.bf16 %v127_v5, %v126_v4  ;;  %v39_v10 = vld [vmem:[%s1026_s1 + $0x10] sm:$0xf]  ;;  %v680_v11 = vpack.c.bf16 %v129_v9, %v128_v8  ;;  %v36_v12 = vld [vmem:[%s1025_s0] sm:$0xff]  ;;  %v131_v14 = vld [vmem:[%s1028_s3 + $0x28] sm:$0xff] }
   0x4   :  { %675 = vmatpush3.bf16.msra.mxu0 %v674_v3  ;;  %v130_v13 = vld [vmem:[%s1028_s3 + $0x20] sm:$0xff] }
   0x5   :  { %574 = vmatprep.subr.mxu0 %v768_v6  ;;  %678 = vmatpush3.bf16.msra.mxu1 %v677_v7 }
   0x6   :  { %679 = vmatprep.subr.bf16.mxu1 %v766_v2 }
   0x7   :  { %15 = vsyncpa [#allocation3], 0  ;;  %v683_v15 = vpack.c.bf16 %v131_v14, %v130_v13  ;;  %v132_v16 = vld [vmem:[%s1028_s3 + $0x30] sm:$0xff]  ;;  %v133_v17 = vld [vmem:[%s1028_s3 + $0x38] sm:$0xff]  ;;  %s769_s11 = smov 16   ;;  %vm222_vm3 = vcmask 261120  }
   0x8   :  { %575 = vmatpush3.msk.msra.mxu0 %vm51_vm1, %v39_v10  ;;  %v686_v18 = vpack.c.bf16 %v133_v17, %v132_v16  ;;  %v134_v19 = vld [vmem:[%s1028_s3 + $0x40] sm:$0xff]  ;;  %v135_v20 = vld [vmem:[%s1028_s3 + $0x48] sm:$0xff]  ;;  %v136_v22 = vld [vmem:[%s1028_s3 + $0x50] sm:$0xff]  ;;  %219 = vrot.lane.b32.xlu0 %v36_v12, %s769_s11  ;;  %vm229_vm4 = vcmask 293888   ;;  %vm491_vm5 = vcmask 130048   ;;  %vm493_vm6 = vcmask 392192  }
   0x9   :  { %577 = vmatmul.mubr.msk.f32.vlgmr.msra.gmra.mrb[0].mxu0 %vm47_vm2, %v36_v12  ;;  %681 = vmatpush3.bf16.msra.mxu1 %v680_v11  ;;  %v689_v21 = vpack.c.bf16 %v135_v20, %v134_v19  ;;  %v137_v23 = vld [vmem:[%s1028_s3 + $0x58] sm:$0xff]  ;;  %v138_v25 = vld [vmem:[%s1028_s3 + $0x60] sm:$0xff]  ;;  %v139_v26 = vld [vmem:[%s1028_s3 + $0x68] sm:$0xff]  ;;  %vm495_vm7 = vcmask 654336  }
   0xa   :  { %682 = vmatprep.subr.bf16.mxu1 %v766_v2  ;;  %706 = vmatprep.subr.bf16.mxu0 %v766_v2  ;;  %v692_v24 = vpack.c.bf16 %v137_v23, %v136_v22  ;;  %v695_v27 = vpack.c.bf16 %v139_v26, %v138_v25  ;;  %v140_v28 = vld [vmem:[%s1028_s3 + $0x70] sm:$0xff]  ;;  %v141_v29 = vld [vmem:[%s1028_s3 + $0x78] sm:$0xff]  ;;  %v512_v31 = vld [vmem:[%s1027_s2] ss:$0 sm:$0xff] }
   0xb   :  { %635 = vmatprep.mubr.msk.f32.mxu0 %vm767_vm0, %v768_v6  ;;  %v698_v30 = vpack.c.bf16 %v141_v29, %v140_v28  ;;  %v224_v32 = vld [vmem:[%s1030_s5] sm:$0xff]  ;;  %v225_v33 = vld [vmem:[%s1030_s5 + $0x8] sm:$0xff]  ;;  %v226_v39 = vld [vmem:[%s1030_s5 + $0x10] sm:$0xff] }
   0xc   :  { %v701_v37 = vpack.c.bf16 %v225_v33, %v224_v32  ;;  %v227_v40 = vld [vmem:[%s1030_s5 + $0x18] sm:$0xff]  ;;  %v228_v42 = vld [vmem:[%s1030_s5 + $0x20] sm:$0xf]  ;;  %v307_v44 = vld [vmem:[%s1031_s6 + $0x8] sm:$0xff] }
   0xd   :  { %684 = vmatpush3.bf16.msra.mxu1 %v683_v15  ;;  %v704_v41 = vpack.c.bf16 %v227_v40, %v226_v39  ;;  %v306_v43 = vld [vmem:[%s1031_s6] sm:$0xff]  ;;  %v308_v45 = vld [vmem:[%s1031_s6 + $0x10] sm:$0xff]  ;;  %v309_v47 = vld [vmem:[%s1031_s6 + $0x18] sm:$0xff] }
   0xe   :  { %685 = vmatprep.subr.bf16.mxu1 %v766_v2  ;;  %v707_v46 = vpack.c.bf16 %v307_v44, %v306_v43  ;;  %v710_v48 = vpack.c.bf16 %v309_v47, %v308_v45  ;;  %v515_v49 = vld [vmem:[%s1029_s4] ss:$0 sm:$0xff]  ;;  %v392_v56 = vld [vmem:[%s1033_s8 + $0x8] sm:$0xff]  ;;  %v393_v58 = vld [vmem:[%s1033_s8 + $0x10] sm:$0xff] }
   0xf   :  { %v391_v55 = vld [vmem:[%s1033_s8] sm:$0xff]  ;;  %v394_v59 = vld [vmem:[%s1033_s8 + $0x18] sm:$0xff]  ;;  %v396_v0 = vld [vmem:[%s1033_s8 + $0x28] sm:$0xff] }
  0x10   :  { %708 = vmatpush3.bf16.msra.mxu0 %v707_v46  ;;  %v713_v57 = vpack.c.bf16 %v392_v56, %v391_v55  ;;  %v716_v62 = vpack.c.bf16 %v394_v59, %v393_v58  ;;  %v395_v63 = vld [vmem:[%s1033_s8 + $0x20] sm:$0xff]  ;;  %v397_v3 = vld [vmem:[%s1033_s8 + $0x30] sm:$0xff]  ;;  %v398_v4 = vld [vmem:[%s1033_s8 + $0x38] sm:$0xff] }
  0x11   :  { %687 = vmatpush3.bf16.msra.mxu1 %v686_v18  ;;  %709 = vmatprep.subr.bf16.mxu0 %v766_v2  ;;  %v719_v1 = vpack.c.bf16 %v396_v0, %v395_v63  ;;  %v722_v5 = vpack.c.bf16 %v398_v4, %v397_v3  ;;  %v400_v7 = vld [vmem:[%s1033_s8 + $0x48] sm:$0xff]  ;;  %v401_v9 = vld [vmem:[%s1033_s8 + $0x50] sm:$0xff]  ;;  %v402_v10 = vld [vmem:[%s1033_s8 + $0x58] sm:$0xff] }
  0x12   :  { %688 = vmatprep.subr.bf16.mxu1 %v766_v2  ;;  %v728_v11 = vpack.c.bf16 %v402_v10, %v401_v9  ;;  %v403_v12 = vld [vmem:[%s1033_s8 + $0x60] sm:$0xff]  ;;  %v404_v13 = vld [vmem:[%s1033_s8 + $0x68] sm:$0xff]  ;;  %v405_v15 = vld [vmem:[%s1033_s8 + $0x70] sm:$0xff] }
  0x13   :  { %v731_v14 = vpack.c.bf16 %v404_v13, %v403_v12  ;;  %v406_v16 = vld [vmem:[%s1033_s8 + $0x78] sm:$0xff]  ;;  %v518_v18 = vld [vmem:[%s1032_s7] ss:$0 sm:$0xff] }
  0x14   :  { %711 = vmatpush3.bf16.msra.mxu0 %v710_v48  ;;  %v734_v17 = vpack.c.bf16 %v406_v16, %v405_v15 }
  0x15   :  { %690 = vmatpush3.bf16.msra.mxu1 %v689_v21  ;;  %712 = vmatprep.subr.bf16.mxu0 %v766_v2 }
  0x16   :  { %691 = vmatprep.subr.bf16.mxu1 %v766_v2 }
  0x19   :  { %693 = vmatpush3.bf16.msra.mxu1 %v692_v24 }
  0x1a   :  { %694 = vmatprep.subr.bf16.mxu1 %v766_v2 }
  0x1d   :  { %696 = vmatpush3.bf16.msra.mxu1 %v695_v27 }
  0x1e   :  { %697 = vmatprep.subr.bf16.mxu1 %v766_v2 }
  0x21   :  { %699 = vmatpush3.bf16.msra.mxu1 %v698_v30 }
  0x22   :  { %700 = vmatprep.subr.bf16.mxu1 %v766_v2 }
  0x7a   :  { %v220_v51 = vpop.permute.xlu0 %219 }
  0xdc   :  { %v121_v34 = vpop.f32.mrb[0].mxu0 }
  0xdd   :  { %v122_v35 = vadd.f32 %v512_v31, %v121_v34  ;;  %v578_v36 = vpop.f32.mrb[1].mxu0 }
  0xdf   :  { %v125_v38 = vmax.f32 %v122_v35, 0.0 }
  0xe1   :  { %612 = vmatmul.mubr.f32.vlgmr.msra.gmra.mrb[0].mxu1 %v125_v38 }
  0xe2   :  { %702 = vmatpush3.bf16.msra.mxu1 %v701_v37  ;;  %624 = vmatprep.mubr.msk.f32.mxu1 %vm767_vm0, %v768_v6 }
  0xe3   :  { %703 = vmatprep.subr.bf16.mxu1 %v766_v2 }
  0xe6   :  { %705 = vmatpush3.bf16.msra.mxu1 %v704_v41 }
  0xe7   :  { %622 = vmatprep.subr.mxu1 %v768_v6 }
  0xea   :  { %623 = vmatpush3.msk.msra.mxu1 %vm51_vm1, %v228_v42 }
 0x1b4   :  { %v215_v50 = vpop.f32.mrb[0].mxu1 }
 0x1b5   :  { %v216_v52 = vadd.f32 %v515_v49, %v215_v50  ;;  %v613_v53 = vpop.f32.mrb[1].mxu1 }
 0x1b7   :  { %v223_v54 = vsel %vm222_vm3, %v216_v52, %v220_v51  ;;  %485 = vrot.lane.b32.xlu0 %v216_v52, %s769_s11  ;;  %s770_s11 = smov 48  }
 0x1b8   :  { %625 = vmatmul.mubr.msk.f32.vlgmr.msra.gmra.mrb[2].mxu1 %vm229_vm4, %v223_v54 }
 0x229   :  { %v486_v26 = vpop.permute.xlu0 %485 }
 0x28b   :  { %v302_v60 = vpop.f32.mrb[2].mxu1 }
 0x28c   :  { %488 = vrot.lane.b32.xlu1 %v302_v60, %s770_s11  ;;  %v626_v61 = vpop.f32.mrb[3].mxu1  ;;  %636 = vmatmul.mubr.msk.f32.vlgmr.msra.gmra.mrb[2].mxu0 %vm222_vm3, %v302_v60 }
 0x28d   :  { %714 = vmatpush3.bf16.msra.mxu0 %v713_v57  ;;  %670 = vmatprep.mubr.msk.f32.mxu0 %vm767_vm0, %v768_v6  ;;  %v399_v6 = vld [vmem:[%s1033_s8 + $0x40] sm:$0xff]  ;;  %s771_s8 = smov [#allocation2]  }
 0x28e   :  { %715 = vmatprep.subr.bf16.mxu0 %v766_v2  ;;  %v725_v8 = vpack.c.bf16 %v400_v7, %v399_v6  ;;  %s504_s15 = sshll.u32 %s771_s8, 4  ;;  %s505_s15 = int_to_ptr.vmem [resolvable:$true] %s504_s15 }
 0x28f   :  { %s742_s7 = scalar_lea.vmem %s505_s15, 128  ;;  %p747_p1 = scmp.lt.s32.totalorder %s505_s15, %s505_s15 }
 0x290   :  { %p743_p0 = scmp.ne.s32.totalorder %s505_s15, %s742_s7  ;;  %p748_p2 = scmp.lt.s32.totalorder %s742_s7, %s742_s7 }
 0x291   :  { %717 = vmatpush3.bf16.msra.mxu0 %v716_v62 }
 0x292   :  { %718 = vmatprep.subr.bf16.mxu0 %v766_v2  ;;  %p749_p3 = por %p748_p2, %p747_p1 }
 0x294   :  { %p750_p4 = pnand %p749_p3, %p743_p0 }
 0x295   :  { %720 = vmatpush3.bf16.msra.mxu0 %v719_v1 }
 0x296   :  { %721 = vmatprep.subr.bf16.mxu0 %v766_v2 }
 0x299   :  { %723 = vmatpush3.bf16.msra.mxu0 %v722_v5 }
 0x29a   :  { %724 = vmatprep.subr.bf16.mxu0 %v766_v2 }
 0x29d   :  { %726 = vmatpush3.bf16.msra.mxu0 %v725_v8 }
 0x29e   :  { %727 = vmatprep.subr.bf16.mxu0 %v766_v2 }
 0x2a1   :  { %729 = vmatpush3.bf16.msra.mxu0 %v728_v11 }
 0x2a2   :  { %730 = vmatprep.subr.bf16.mxu0 %v766_v2 }
 0x2a5   :  { %732 = vmatpush3.bf16.msra.mxu0 %v731_v14 }
 0x2a6   :  { %733 = vmatprep.subr.bf16.mxu0 %v766_v2  ;;  %v520_v2 = vld [vmem:[%s1034_s9] ss:$0 sm:$0xff] }
 0x2a9   :  { %735 = vmatpush3.bf16.msra.mxu0 %v734_v17 }
 0x2fe   :  { %v489_v27 = vpop.permute.xlu1 %488 }
 0x35f   :  { %v386_v19 = vpop.f32.mrb[2].mxu0 }
 0x360   :  { %v387_v20 = vadd.f32 %v518_v18, %v386_v19  ;;  %v637_v21 = vpop.f32.mrb[3].mxu0 }
 0x362   :  { %v390_v22 = vmax.f32 %v387_v20, 0.0 }
 0x364   :  { %671 = vmatmul.mubr.f32.vlgmr.msra.gmra.mrb[4].mxu0 %v390_v22 }
 0x437   :  { %v480_v23 = vpop.f32.mrb[4].mxu0 }
 0x438   :  { %v481_v24 = vadd.f32 %v520_v2, %v480_v23  ;;  %v672_v25 = vpop.f32.mrb[5].mxu0 }
 0x43a   :  { %v492_v28 = vsel %vm491_vm5, %v481_v24, %v486_v26 }
 0x43b   :  { %v494_v29 = vsel %vm493_vm6, %v492_v28, %v489_v27 }
 0x43c   :  { %v496_v30 = vsel %vm495_vm7, %v494_v29, 0.0 }
 0x43d   :  { %497 = vst [vmem:[#allocation2] sm:$0xff] %v496_v30 }
 0x43e   :  { %753 = shalt.err (!%p750_p4)
}
 0x43f   :  { %s754_s16 = scalar_lea.hbm %s1035_s10, 128 }
 0x440   :  { %p755_p5 = scmp.ne.s32.totalorder %s1035_s10, %s754_s16  ;;  %p758_p6 = scmp.lt.u32.totalorder %s754_s16, %s1035_s10 }
 0x442   :  { %p760_p7 = pnand %p758_p6, %p755_p5 }
 0x444   :  { %763 = shalt.err (!%p760_p7)
}
 0x445   :  { %507 = dma.vmem_to_hbm [thread:$0]  %s505_s15, 128, %s1035_s10, [#allocation3]  }
 0x446   :  { %764 = dma.done.wait [#allocation3], 128  }
 0x447   :  { %765 = vsyncadd [#allocation3], 4294967168 }
 0x448   :  { %511 = vsyncpa [#allocation3], 1 }

</bundles_post_ra>
